<compile_context>
chip_gen: v7x
topology: tpu7x:2x2x1
jax: 0.10.0
libtpu: 0.0.40
codegen_flags: <defaults>
</compile_context>

<pallas_src>
import functools

import jax
import jax.numpy as jnp
from jax import lax
from jax.experimental import pallas as pl
from jax.experimental.pallas import tpu as pltpu


# -----------------------------------------------------------------------------
# Pallas kernel: fused ConvLSTM cell (one deep matmul + channel-major epilogue)
# -----------------------------------------------------------------------------
def _make_convlstm_kernel(K, tH, W, Chid, Cg, use_peephole):
    tR = tH * W
    C = Chid
    F = 4 * Chid

    def kernel(xh_ref,   # (Hp, W, Cg)   bf16  kx-shift-stacked padded [x|h]
               c_ref,    # (Chid, tR)    f32   previous cell state (ch-major)
               w_ref,    # (K*Cg, F)     bf16  fused conv weights (zero-padded)
               b_ref,    # (1, F)        f32   fused gate bias
               *rest):
        if use_peephole:
            wci_ref, wcf_ref, wco_ref, out_ref = rest
        else:
            (out_ref,) = rest

        t = pl.program_id(1)
        h0 = t * tH   # first padded image row feeding this tile (ky = 0)

        # ky taps are aligned leading-dim windows; the reshape is a pure view
        # (W is a whole sublane tile).  Lane-concat at 128-aligned offsets ->
        # ONE deep matmul; padding lanes/rows are zero so they contribute 0.
        pieces = [xh_ref[pl.ds(h0 + ky, tH)].reshape(tR, Cg) for ky in range(K)]
        x_op = pieces[0] if K == 1 else jnp.concatenate(pieces, axis=-1)
        acc = jnp.dot(x_op, w_ref[...], preferred_element_type=jnp.float32)
        acc = acc + b_ref[...]                      # (tR, F) f32

        # One 128x128 f32 transpose (XLU) -> channel-major: all gate math
        # below is at full 128-lane density and the output store is dense.
        acc_t = jnp.transpose(acc)                  # (F, tR)
        c_prev = c_ref[...]                         # (C, tR)

        if not use_peephole:
            # Default module state: peepholes are zeros -> single full-width
            # sigmoid over the fused accumulator; tanh only on the gc block.
            sig = jax.nn.sigmoid(acc_t)
            ci = sig[0 * C:1 * C]
            cf = sig[1 * C:2 * C]
            co = sig[3 * C:4 * C]
            cc = cf * c_prev + ci * jnp.tanh(acc_t[2 * C:3 * C])
            ch = co * jnp.tanh(cc)
        else:
            col = pl.multiple_of(t * tR, tR)        # aligned lane window
            wci = wci_ref[:, pl.ds(col, tR)]
            wcf = wcf_ref[:, pl.ds(col, tR)]
            wco = wco_ref[:, pl.ds(col, tR)]
            ci = jax.nn.sigmoid(acc_t[0 * C:1 * C] + c_prev * wci)
            cf = jax.nn.sigmoid(acc_t[1 * C:2 * C] + c_prev * wcf)
            cc = cf * c_prev + ci * jnp.tanh(acc_t[2 * C:3 * C])
            co = jax.nn.sigmoid(acc_t[3 * C:4 * C] + cc * wco)
            ch = co * jnp.tanh(cc)

        # Lane-dense (2*Chid, tR) store, already in NCHW-friendly order.
        out_ref[...] = jnp.concatenate([ch, cc], axis=0)

    return kernel


# -----------------------------------------------------------------------------
# Glue: tiling choice, weight packing, pallas_call wrapper
# -----------------------------------------------------------------------------
def _round_up(x, m):
    return (x + m - 1) // m * m


def _choose_tile_h(H, W, target_rows=256):
    """tH dividing H: prefer lane-dense tiles (tH*W % 128 == 0), >= 2 row
    tiles per image (keeps each v7x TensorCore pipelined), small accumulator."""
    divs = [t for t in range(1, H + 1) if H % t == 0]
    for mod in (128, 8, 1):
        cands = [t for t in divs if (t * W) % mod == 0]
        if not cands:
            continue
        pref = [t for t in cands if t * W <= target_rows and H // t >= 2]
        if pref:
            return max(pref)
        pref = [t for t in cands if t * W <= target_rows]
        if pref:
            return max(pref)
        return min(cands)
    return H


def _pack_weights(params, K, Chid, Ctot, Cg):
    """Fuse gates along lanes, [x|h] along the contraction, fold (ky,kx,c)
    into rows with per-ky zero padding to Cg: (K*Cg, 4*Chid) bf16."""
    F = 4 * Chid

    def tap(w):  # (O, I, K, K) -> (K, K, I, O)
        return jnp.transpose(w, (2, 3, 1, 0))

    wx = jnp.concatenate([tap(params["Wxi"]), tap(params["Wxf"]),
                          tap(params["Wxc"]), tap(params["Wxo"])], axis=-1)
    wh = jnp.concatenate([tap(params["Whi"]), tap(params["Whf"]),
                          tap(params["Whc"]), tap(params["Who"])], axis=-1)
    w = jnp.concatenate([wx, wh], axis=2)                 # (K, K, Ctot, F)
    w = w.reshape(K, K * Ctot, F)
    w = jnp.pad(w, ((0, 0), (0, Cg - K * Ctot), (0, 0)))  # zero pad rows
    w = w.reshape(K * Cg, F).astype(jnp.bfloat16)
    b = jnp.concatenate([params["bxi"], params["bxf"],
                         params["bxc"], params["bxo"]]).reshape(1, F)
    return w, b.astype(jnp.float32)


@functools.partial(jax.jit, static_argnames=("kernel_size", "use_peephole",
                                              "input_dropout_rate",
                                              "recurrent_dropout_rate"))
def convlstm_cell_pallas(x, h, c, params, kernel_size, use_peephole=False,
                         input_dropout_rate=0.0, recurrent_dropout_rate=0.0):
    """ConvLSTM cell forward.  x:(N,Cin,H,W)  h,c:(N,Chid,H,W) (NCHW).
    Returns (ch, cc) in NCHW, matching the PyTorch module."""
    # The PyTorch module applies nn.Dropout only when 0 < rate < 1; otherwise
    # it is nn.Identity (including rate == 1.0, per the original code).
    if 0.0 < input_dropout_rate < 1.0 or 0.0 < recurrent_dropout_rate < 1.0:
        raise NotImplementedError(
            "dropout with 0 < rate < 1 is not supported in the Pallas kernel")

    N, Cin, H, W = x.shape
    Chid = h.shape[1]
    K = kernel_size
    assert K % 2 == 1, "kernel_size must be odd (symmetric SAME padding)"
    pad = (K - 1) // 2
    Ctot = Cin + Chid
    F = 4 * Chid
    HW = H * W
    Cg = _round_up(K * Ctot, 128)        # lane-tile padded kx-fold width

    tH = _choose_tile_h(H, W)
    nTh = H // tH
    tR = tH * W
    Hp = H + 2 * pad

    # ---- activations --------------------------------------------------------
    # kx-shift stack: xh_sh[n, y, x, kx*Ctot + c] = pad([x|h])[n, y, x+kx, c].
    # K x HBM traffic on the (small) activations buys fully aligned in-kernel
    # views and a single deep matmul (no VMEM relayout copies).
    # NOTE(recurrence): for a multi-step loop, keep h/c/outputs in these
    # layouts across time; only the h half of this stack changes per step.
    x_nhwc = jnp.transpose(x, (0, 2, 3, 1))
    h_nhwc = jnp.transpose(h, (0, 2, 3, 1))
    xh = jnp.concatenate([x_nhwc, h_nhwc], axis=-1).astype(jnp.bfloat16)
    xh = jnp.pad(xh, ((0, 0), (0, 0), (pad, pad), (0, 0)))        # pad W only
    xh_sh = jnp.concatenate([xh[:, :, kx:kx + W, :] for kx in range(K)],
                            axis=-1)                               # (N,H,W,K*Ctot)
    xh_sh = jnp.pad(xh_sh, ((0, 0), (pad, pad), (0, 0), (0, Cg - K * Ctot)))

    # cell state: channel-major, no transpose needed from NCHW (free reshape)
    c_cm = c.reshape(N * Chid, HW).astype(jnp.float32)

    # ---- weights -------------------------------------------------------------
    w_all, b_all = _pack_weights(params, K, Chid, Ctot, Cg)

    inputs = [xh_sh, c_cm, w_all, b_all]
    in_specs = [
        # padded/shifted image: indexed by n only -> resident across row tiles.
        # TODO(synk): halo-tile this block ((tH+K-1) rows) for very large
        # images so it keeps fitting v7x's 64 MiB VMEM.
        pl.BlockSpec((None, Hp, W, Cg), lambda n, t: (n, 0, 0, 0)),
        pl.BlockSpec((Chid, tR), lambda n, t: (n, t)),
        pl.BlockSpec((K * Cg, F), lambda n, t: (0, 0)),
        pl.BlockSpec((1, F), lambda n, t: (0, 0)),
    ]
    if use_peephole:
        def pee(wc):  # (1, Chid, H, W) -> (Chid, H*W) channel-major, resident
            return wc.reshape(Chid, HW).astype(jnp.float32)
        inputs += [pee(params["Wci"]), pee(params["Wcf"]), pee(params["Wco"])]
        in_specs += [pl.BlockSpec((Chid, HW), lambda n, t: (0, 0))] * 3

    # explicit VMEM budget from the real block sizes (double-buffered + slack)
    blk_bytes = (Hp * W * Cg * 2 + Chid * tR * 4 + K * Cg * F * 2 + F * 4
                 + 2 * Chid * tR * 4
                 + (3 * Chid * HW * 4 if use_peephole else 0))
    vmem_limit = int(min(100 * 2**20, max(4 * 2**20, 4 * blk_bytes)))

    kernel = _make_convlstm_kernel(K, tH, W, Chid, Cg, use_peephole)

    out_cm = pl.pallas_call(
        kernel,
        out_shape=jax.ShapeDtypeStruct((N * 2 * Chid, HW), jnp.float32),
        grid=(N, nTh),
        in_specs=in_specs,
        out_specs=pl.BlockSpec((2 * Chid, tR), lambda n, t: (n, t)),
        compiler_params=pltpu.CompilerParams(
            dimension_semantics=("parallel", "parallel"),
            vmem_limit_bytes=vmem_limit),
    )(*inputs)

    # channel-major rows -> NCHW needs only a free reshape + channel split.
    out = out_cm.reshape(N, 2 * Chid, H, W)
    ch = out[:, :Chid]
    cc = out[:, Chid:]
    return ch, cc


# -----------------------------------------------------------------------------
# Pure-JAX reference (mirrors the PyTorch forward exactly) for validation
# -----------------------------------------------------------------------------
def convlstm_cell_ref(x, h, c, params):
    dn = ("NCHW", "OIHW", "NCHW")

    def conv(inp, w, bias=None):
        out = lax.conv_general_dilated(inp, w, (1, 1), "SAME",
                                       dimension_numbers=dn)
        if bias is not None:
            out = out + bias[None, :, None, None]
        return out

    ci = jax.nn.sigmoid(conv(x, params["Wxi"], params["bxi"])
                        + conv(h, params["Whi"]) + c * params["Wci"])
    cf = jax.nn.sigmoid(conv(x, params["Wxf"], params["bxf"])
                        + conv(h, params["Whf"]) + c * params["Wcf"])
    cc = cf * c + ci * jnp.tanh(conv(x, params["Wxc"], params["bxc"])
                                + conv(h, params["Whc"]))
    co = jax.nn.sigmoid(conv(x, params["Wxo"], params["bxo"])
                        + conv(h, params["Who"]) + cc * params["Wco"])
    ch = co * jnp.tanh(cc)
    return ch, cc


# -----------------------------------------------------------------------------
# Main
# -----------------------------------------------------------------------------
if __name__ == "__main__":
    N, Cin, Chid, H, W, K = 2, 4, 32, 16, 16, 3

    key = jax.random.PRNGKey(0)
    keys = jax.random.split(key, 20)

    def u(k, shape, fan_in):
        bound = 1.0 / jnp.sqrt(jnp.float32(fan_in))
        return jax.random.uniform(k, shape, jnp.float32, -bound, bound)

    fan_x = Cin * K * K
    fan_h = Chid * K * K
    params = {
        "Wxi": u(keys[0], (Chid, Cin, K, K), fan_x),
        "Wxf": u(keys[1], (Chid, Cin, K, K), fan_x),
        "Wxc": u(keys[2], (Chid, Cin, K, K), fan_x),
        "Wxo": u(keys[3], (Chid, Cin, K, K), fan_x),
        "Whi": u(keys[4], (Chid, Chid, K, K), fan_h),
        "Whf": u(keys[5], (Chid, Chid, K, K), fan_h),
        "Whc": u(keys[6], (Chid, Chid, K, K), fan_h),
        "Who": u(keys[7], (Chid, Chid, K, K), fan_h),
        "bxi": u(keys[8], (Chid,), fan_x),
        "bxf": u(keys[9], (Chid,), fan_x),
        "bxc": u(keys[10], (Chid,), fan_x),
        "bxo": u(keys[11], (Chid,), fan_x),
        # init_hidden() creates the peephole weights as zeros:
        "Wci": jnp.zeros((1, Chid, H, W), jnp.float32),
        "Wcf": jnp.zeros((1, Chid, H, W), jnp.float32),
        "Wco": jnp.zeros((1, Chid, H, W), jnp.float32),
    }

    x = jax.random.normal(keys[12], (N, Cin, H, W), jnp.float32)
    h = jax.random.normal(keys[13], (N, Chid, H, W), jnp.float32)
    c = jax.random.normal(keys[14], (N, Chid, H, W), jnp.float32)

    # bf16 matmul inputs/weights (f32 accumulation) => looser tolerance vs f32.
    TOL = dict(atol=2e-2, rtol=2e-2)

    # --- default module state (init_hidden zero peepholes, skipped in-kernel) --
    ch, cc = convlstm_cell_pallas(x, h, c, params, kernel_size=K,
                                  use_peephole=False)
    jax.block_until_ready((ch, cc))
    ch_ref, cc_ref = convlstm_cell_ref(x, h, c, params)
    assert bool(jnp.allclose(ch, ch_ref, **TOL)), "ch mismatch (no peephole)"
    assert bool(jnp.allclose(cc, cc_ref, **TOL)), "cc mismatch (no peephole)"

    # --- generic path with non-zero peephole weights ---
    params_p = dict(params)
    params_p["Wci"] = 0.1 * jax.random.normal(keys[15], (1, Chid, H, W), jnp.float32)
    params_p["Wcf"] = 0.1 * jax.random.normal(keys[16], (1, Chid, H, W), jnp.float32)
    params_p["Wco"] = 0.1 * jax.random.normal(keys[17], (1, Chid, H, W), jnp.float32)
    ch2, cc2 = convlstm_cell_pallas(x, h, c, params_p, kernel_size=K,
                                    use_peephole=True)
    jax.block_until_ready((ch2, cc2))
    ch2_ref, cc2_ref = convlstm_cell_ref(x, h, c, params_p)
    assert bool(jnp.allclose(ch2, ch2_ref, **TOL)), "ch mismatch (peephole)"
    assert bool(jnp.allclose(cc2, cc2_ref, **TOL)), "cc mismatch (peephole)"

    print("KERNEL_OK")
</pallas_src>

<mosaic_0001>
module attributes {stable_mosaic.version = 11 : i64} {
  func.func @kernel(%arg0: i32, %arg1: i32, %arg2: memref<1x18x16x128xbf16, #tpu.memory_space<vmem>>, %arg3: memref<32x128xf32, #tpu.memory_space<vmem>>, %arg4: memref<384x128xbf16, #tpu.memory_space<vmem>>, %arg5: memref<1x128xf32, #tpu.memory_space<vmem>>, %arg6: memref<64x128xf32, #tpu.memory_space<vmem>>) attributes {dimension_semantics = [#tpu.dimension_semantics<parallel>, #tpu.dimension_semantics<parallel>], iteration_bounds = array<i64: 2, 2>, scalar_prefetch = 0 : i64, scratch_operands = 0 : i64, tpu.core_type = #tpu.core_type<tc>, window_params = [{transform_indices = @transform_0, window_bounds = array<i64: 1, 18, 16, 128>}, {transform_indices = @transform_1, window_bounds = array<i64: 32, 128>}, {pipeline_mode = #tpu.pipeline_mode<synchronous>, transform_indices = @transform_2, window_bounds = array<i64: 384, 128>}, {pipeline_mode = #tpu.pipeline_mode<synchronous>, transform_indices = @transform_3, window_bounds = array<i64: 1, 128>}, {transform_indices = @transform_4, window_bounds = array<i64: 64, 128>}]} {
    %c8_i32 = arith.constant 8 : i32
    %0 = arith.muli %arg1, %c8_i32 : i32
    %c0_i32 = arith.constant 0 : i32
    %1 = arith.addi %0, %c0_i32 : i32
    %c0 = arith.constant 0 : index
    %2 = arith.index_cast %1 : i32 to index
    %c0_0 = arith.constant 0 : index
    %c0_1 = arith.constant 0 : index
    %3 = vector.load %arg2[%c0, %2, %c0_0, %c0_1] : memref<1x18x16x128xbf16, #tpu.memory_space<vmem>>, vector<1x8x16x128xbf16>
    %4 = vector.shape_cast %3 : vector<1x8x16x128xbf16> to vector<8x16x128xbf16>
    %5 = vector.shape_cast %4 : vector<8x16x128xbf16> to vector<128x128xbf16>
    %c1_i32 = arith.constant 1 : i32
    %6 = arith.addi %0, %c1_i32 : i32
    %c0_2 = arith.constant 0 : index
    %7 = arith.index_cast %6 : i32 to index
    %c0_3 = arith.constant 0 : index
    %c0_4 = arith.constant 0 : index
    %8 = vector.load %arg2[%c0_2, %7, %c0_3, %c0_4] : memref<1x18x16x128xbf16, #tpu.memory_space<vmem>>, vector<1x8x16x128xbf16>
    %9 = vector.shape_cast %8 : vector<1x8x16x128xbf16> to vector<8x16x128xbf16>
    %10 = vector.shape_cast %9 : vector<8x16x128xbf16> to vector<128x128xbf16>
    %c2_i32 = arith.constant 2 : i32
    %11 = arith.addi %0, %c2_i32 : i32
    %c0_5 = arith.constant 0 : index
    %12 = arith.index_cast %11 : i32 to index
    %c0_6 = arith.constant 0 : index
    %c0_7 = arith.constant 0 : index
    %13 = vector.load %arg2[%c0_5, %12, %c0_6, %c0_7] : memref<1x18x16x128xbf16, #tpu.memory_space<vmem>>, vector<1x8x16x128xbf16>
    %14 = vector.shape_cast %13 : vector<1x8x16x128xbf16> to vector<8x16x128xbf16>
    %15 = vector.shape_cast %14 : vector<8x16x128xbf16> to vector<128x128xbf16>
    %16 = tpu.concatenate %5, %10, %15 in 1 : vector<128x128xbf16>, vector<128x128xbf16>, vector<128x128xbf16> -> vector<128x384xbf16>
    %c0_8 = arith.constant 0 : index
    %c0_9 = arith.constant 0 : index
    %17 = vector.load %arg4[%c0_8, %c0_9] : memref<384x128xbf16, #tpu.memory_space<vmem>>, vector<384x128xbf16>
    %cst = arith.constant dense<0.000000e+00> : vector<128x128xf32>
    %18 = tpu.matmul %16, %17, %cst {dimension_numbers = #tpu.dot_dimension_numbers<[1], [0], [0], [1], [0, 0, 1, 1], [], []>} : vector<128x384xbf16>, vector<384x128xbf16>, vector<128x128xf32> -> vector<128x128xf32>
    %c0_10 = arith.constant 0 : index
    %c0_11 = arith.constant 0 : index
    %19 = vector.load %arg5[%c0_10, %c0_11] : memref<1x128xf32, #tpu.memory_space<vmem>>, vector<1x128xf32>
    %20 = vector.broadcast %19 : vector<1x128xf32> to vector<128x128xf32>
    %21 = arith.addf %18, %20 : vector<128x128xf32>
    %22 = tpu.transpose %21, [1, 0] : vector<128x128xf32> -> vector<128x128xf32>
    %c0_12 = arith.constant 0 : index
    %c0_13 = arith.constant 0 : index
    %23 = vector.load %arg3[%c0_12, %c0_13] : memref<32x128xf32, #tpu.memory_space<vmem>>, vector<32x128xf32>
    %24 = arith.negf %22 : vector<128x128xf32>
    %25 = math.exp %24 : vector<128x128xf32>
    %cst_14 = arith.constant 1.000000e+00 : f32
    %26 = vector.broadcast %cst_14 : f32 to vector<128x128xf32>
    %27 = arith.addf %26, %25 : vector<128x128xf32>
    %28 = arith.divf %26, %27 : vector<128x128xf32>
    %29 = vector.extract_strided_slice %28 {offsets = [0, 0], sizes = [32, 128], strides = [1, 1]} : vector<128x128xf32> to vector<32x128xf32>
    %30 = vector.extract_strided_slice %28 {offsets = [32, 0], sizes = [32, 128], strides = [1, 1]} : vector<128x128xf32> to vector<32x128xf32>
    %31 = vector.extract_strided_slice %28 {offsets = [96, 0], sizes = [32, 128], strides = [1, 1]} : vector<128x128xf32> to vector<32x128xf32>
    %32 = arith.mulf %30, %23 : vector<32x128xf32>
    %33 = vector.extract_strided_slice %22 {offsets = [64, 0], sizes = [32, 128], strides = [1, 1]} : vector<128x128xf32> to vector<32x128xf32>
    %34 = math.tanh %33 : vector<32x128xf32>
    %35 = arith.mulf %29, %34 : vector<32x128xf32>
    %36 = arith.addf %32, %35 : vector<32x128xf32>
    %37 = math.tanh %36 : vector<32x128xf32>
    %38 = arith.mulf %31, %37 : vector<32x128xf32>
    %39 = tpu.concatenate %38, %36 in 0 : vector<32x128xf32>, vector<32x128xf32> -> vector<64x128xf32>
    %c0_15 = arith.constant 0 : index
    %c0_16 = arith.constant 0 : index
    %40 = vector.load %arg6[%c0_15, %c0_16] : memref<64x128xf32, #tpu.memory_space<vmem>>, vector<64x128xf32>
    tpu.vector_store %arg6[%c0_15, %c0_16], %39 {strides = array<i32>} : memref<64x128xf32, #tpu.memory_space<vmem>>, vector<64x128xf32>,
    return
  }
  func.func @transform_0(%arg0: i32, %arg1: i32) -> (i32, i32, i32, i32) {
    %c0_i32 = arith.constant 0 : i32
    %c0_i32_0 = arith.constant 0 : i32
    %c0_i32_1 = arith.constant 0 : i32
    %c0_i32_2 = arith.constant 0 : i32
    return %arg0, %c0_i32, %c0_i32_0, %c0_i32_1 : i32, i32, i32, i32
  }
  func.func @transform_1(%arg0: i32, %arg1: i32) -> (i32, i32) {
    %c0_i32 = arith.constant 0 : i32
    return %arg0, %arg1 : i32, i32
  }
  func.func @transform_2(%arg0: i32, %arg1: i32) -> (i32, i32) {
    %c0_i32 = arith.constant 0 : i32
    %c0_i32_0 = arith.constant 0 : i32
    %c0_i32_1 = arith.constant 0 : i32
    return %c0_i32, %c0_i32_0 : i32, i32
  }
  func.func @transform_3(%arg0: i32, %arg1: i32) -> (i32, i32) {
    %c0_i32 = arith.constant 0 : i32
    %c0_i32_0 = arith.constant 0 : i32
    %c0_i32_1 = arith.constant 0 : i32
    return %c0_i32, %c0_i32_0 : i32, i32
  }
  func.func @transform_4(%arg0: i32, %arg1: i32) -> (i32, i32) {
    %c0_i32 = arith.constant 0 : i32
    return %arg0, %arg1 : i32, i32
  }
}

</mosaic_0001>

<bundles_post_ra>
// kernel: convlstm_cell_pallas.1
= control target key start
LH: loop header
LB: loop body
LE: loop exit
PB: predicated region body
PF: predicated region fallthrough
CT: control target
= control target key end

     0   :  { %s1669_s15 = smov 0   ;;  %s1671_s16 = smov 0   ;;  %s1914_s0 = inlined_call_operand.vmem [shape: bf16[2,18,16,128], index: 0, kind: input, shape index: {}]   ;;  %s1915_s1 = inlined_call_operand.vmem [shape: f32[64,256], index: 1, kind: input, shape index: {}]   ;;  %s1916_s2 = inlined_call_operand.vmem [shape: bf16[384,128], index: 2, kind: input, shape index: {}]   ;;  %s1917_s3 = inlined_call_operand.vmem [shape: f32[1,128], index: 3, kind: input, shape index: {}]   ;;  %s1918_s4 = inlined_call_operand.vmem [shape: f32[128,256], index: 4, kind: output, shape index: {}]  }
   0x1   :  { %s1673_s17 = smov 0   ;;  %s1675_s18 = smov 0  }
   0x2   :  { %s1677_s19 = smov 0   ;;  %s1679_s20 = smov 0  }
   0x3   :  { %s1681_s21 = smov 0  }
   0x4 LB: > { %s23_s22 = sadd.s32 1, %s1634_s19  ;;  %s26_s23 = sadd.s32 1, %s1638_s20  ;;  %s1642_s21 = sphi %s1681_s21, %s14_s21   ;;  %s1638_s20 = sphi %s1679_s20, %s1925_s20   ;;  %s1634_s19 = sphi %s1677_s19, %s1924_s19   ;;  %s1630_s18 = sphi %s1675_s18, %s1923_s18   ;;  %s1626_s17 = sphi %s1673_s17, %s1922_s17   ;;  %s1622_s16 = sphi %s1671_s16, %s1921_s16   ;;  %s1618_s15 = sphi %s1669_s15, %s1920_s15  }
   0x5   : > { %p24_p0 = scmp.ge.s32.totalorder %s23_s22, 2  ;;  %s1183_s24 = sadd.s32 4294967295, %s1642_s21  }
   0x6   : > { %p68_p1 = scmp.ne.s32.totalorder %s1622_s16, %s1618_s15  ;;  %p69_p2 = scmp.eq.s32.totalorder %s1642_s21, 0 }
   0x7   : > { %s1927_s22 = smov (%p24_p0, %s23_s22), 0  ;;  %s1929_s23 = smov (!%p24_p0, %s26_s23), %s1638_s20 }
   0x8   : > { %p28_p3 = scmp.ge.s32.totalorder %s1929_s23, 2  ;;  %p142_p4 = scmp.eq.s32.totalorder %s1183_s24, 3 }
   0x9   : > { %s57_s25 = ssub.s32 %s1634_s19, %s1927_s22  ;;  %p70_p5 = por %p69_p2, %p68_p1 }
   0xa   : > { %s1931_s23 = smov (%p28_p3, %s1929_s23), 0  ;;  %p1717_p6 = por %p142_p4, %p68_p1 }
   0xb   : > { %s56_s27 = ssub.s32 %s1638_s20, %s1931_s23  ;;  %s61_s29 = sadd.s32 1, %s1622_s16 }
   0xc   : > { %s58_s28 = sor.u32 %s57_s25, %s56_s27  ;;  %p1186_p8 = scmp.ge.s32.totalorder %s1642_s21, 4 }
   0xd   : > { %p59_p7 = scmp.eq.s32.totalorder %s58_s28, 0 }
   0xe   : > { %170 = sbr.rel (%p1186_p8) target bundleno = 29 (0x1d), region = 24 }
   0xf   : > { %s1725_s30 = scalar_select %p59_p7, %s1622_s16, %s61_s29  }
  0x15   : > { %181 = sbr.rel (!%p70_p5) target bundleno = 29 (0x1d), region = 32  ;;  %s183_s5 = sand.u32 (%p70_p5), 1, %s1622_s16  }
  0x16   : > { %s1301_s6 = sshll.u32 (%p70_p5), %s1638_s20, 3  ;;  %s1187_s7 = sshll.u32 (%p70_p5), %s183_s5, 5 }
  0x17   : > { %s188_s8 = sadd.s32 (%p70_p5), %s1634_s19, %s1301_s6  ;;  %s185_s13 = scalar_lea.vmem (%p70_p5), [#allocation2], %s1187_s7 }
  0x18   : > { %s1190_s9 = sshll.u32 (%p70_p5), %s188_s8, 3 }
  0x19   : > { %s190_s12 = scalar_lea.vmem (%p70_p5), %s1915_s1, %s1190_s9 }
  0x1a   : > { %v224_v0 = vld [vmem:[%s190_s12] sm:$0xff] (%p70_p5)  ;;  %v226_v1 = vld [vmem:[%s190_s12 + $0x10] sm:$0xff] (%p70_p5) }
  0x1b   : > { %v228_v2 = vld [vmem:[%s190_s12 + $0x20] sm:$0xff] (%p70_p5)  ;;  %225 = vst [vmem:[%s185_s13] sm:$0xff] (%p70_p5), %v224_v0  ;;  %227 = vst [vmem:[%s185_s13 + $0x8] sm:$0xff] (%p70_p5), %v226_v1  ;;  %v230_v3 = vld [vmem:[%s190_s12 + $0x30] sm:$0xff] (%p70_p5) }
  0x1c   : > { %229 = vst [vmem:[%s185_s13 + $0x10] sm:$0xff] %v228_v2  ;;  %231 = vst [vmem:[%s185_s13 + $0x18] sm:$0xff] %v230_v3 }
  0x1d PF: > { %p1191_p9 = scmp.ge.s32.totalorder %s1642_s21, 1  ;;  %p236_p10 = scmp.lt.s32.totalorder %s1642_s21, 5 }
  0x1f   : > { %p237_p11 = pnand %p1191_p9, %p236_p10 }
  0x20   : > { %v1476_v4 = vld [vmem:[%s1916_s2 + $0x40] sm:$0xff] (!%p237_p11)   ;;  %v1479_v7 = vld [vmem:[%s1916_s2 + $0x48] sm:$0xff] (!%p237_p11)   ;;  %v1482_v10 = vld [vmem:[%s1916_s2 + $0x50] sm:$0xff] (!%p237_p11)   ;;  %p272_p12 = scmp.lt.s32.totalorder (!%p237_p11), %s1630_s18, 1  ;;  %s1303_s8 = sshll.u32 (!%p237_p11), %s1626_s17, 6 }
  0x21   : > { %240 = sbr.rel (%p237_p11) target bundleno = 510 (0x1fe), region = 70  ;;  %v1477_v5 = vld [vmem:[%s1916_s2] sm:$0xff] (!%p237_p11)   ;;  %1307 = vmatprep.subr.bf16.mxu0 (!%p237_p11), %v1476_v4  ;;  %v1480_v8 = vld [vmem:[%s1916_s2 + $0x8] sm:$0xff] (!%p237_p11)   ;;  %v1483_v11 = vld [vmem:[%s1916_s2 + $0x10] sm:$0xff] (!%p237_p11)   ;;  %s243_s11 = sand.u32 (!%p237_p11), 1, %s1618_s15  }
  0x22   : > { %v1478_v6 = vld [vmem:[%s1916_s2 + $0x80] sm:$0xff] (!%p237_p11)   ;;  %1308 = vmatpush3.bf16.msra.mxu0 (!%p237_p11), %v1477_v5  ;;  %v1481_v9 = vld [vmem:[%s1916_s2 + $0x88] sm:$0xff] (!%p237_p11)   ;;  %v1484_v12 = vld [vmem:[%s1916_s2 + $0x90] sm:$0xff] (!%p237_p11)   ;;  %s1192_s12 = sshll.u32 (!%p237_p11), %s243_s11, 5  ;;  %s1193_s14 = sshll.u32 (!%p237_p11), %s243_s11, 6 }
  0x23   : > { %1387 = vmatprep.subr.bf16.mxu1 (!%p237_p11), %v1478_v6  ;;  %1309 = vmatprep.subr.bf16.mxu0 (!%p237_p11), %v1479_v7  ;;  %v1485_v13 = vld [vmem:[%s1916_s2 + $0x58] sm:$0xff] (!%p237_p11)   ;;  %v1488_v16 = vld [vmem:[%s1916_s2 + $0x60] sm:$0xff] (!%p237_p11)   ;;  %v1491_v19 = vld [vmem:[%s1916_s2 + $0x68] sm:$0xff] (!%p237_p11)   ;;  %s1862_s15 = scalar_lea.vmem (!%p237_p11), [#allocation2], %s1192_s12  ;;  %s1867_s24 = scalar_lea.vmem (!%p237_p11), [#allocation3], %s1193_s14 }
  0x24   : > { %1388 = vmatpush3.bf16.msra.mxu1 (!%p237_p11), %v1478_v6  ;;  %v1486_v14 = vld [vmem:[%s1916_s2 + $0x18] sm:$0xff] (!%p237_p11)   ;;  %v1490_v17 = vld [vmem:[%s1916_s2 + $0xa0] sm:$0xff] (!%p237_p11)   ;;  %v1493_v20 = vld [vmem:[%s1916_s2 + $0xa8] sm:$0xff] (!%p237_p11)  }
  0x25   : > { %1389 = vmatprep.subr.bf16.mxu1 (!%p237_p11), %v1481_v9  ;;  %v1487_v15 = vld [vmem:[%s1916_s2 + $0x98] sm:$0xff] (!%p237_p11)   ;;  %v1489_v18 = vld [vmem:[%s1916_s2 + $0x20] sm:$0xff] (!%p237_p11)   ;;  %v1492_v21 = vld [vmem:[%s1916_s2 + $0x28] sm:$0xff] (!%p237_p11)  }
  0x26   : > { %1310 = vmatpush3.bf16.msra.mxu0 (!%p237_p11), %v1480_v8  ;;  %v1494_v22 = vld [vmem:[%s1916_s2 + $0x70] sm:$0xff] (!%p237_p11)   ;;  %v1497_v25 = vld [vmem:[%s1916_s2 + $0x78] sm:$0xff] (!%p237_p11)   ;;  %v1843_v54 = vld [vmem:[%s1917_s3] ss:$0 sm:$0xff] (!%p237_p11) }
  0x27   : > { %1311 = vmatprep.subr.bf16.mxu0 (!%p237_p11), %v1482_v10  ;;  %v1495_v23 = vld [vmem:[%s1916_s2 + $0x30] sm:$0xff] (!%p237_p11)   ;;  %v1499_v27 = vld [vmem:[%s1916_s2 + $0xb8] sm:$0xff] (!%p237_p11)  }
  0x28   : > { %1390 = vmatpush3.bf16.msra.mxu1 %v1481_v9  ;;  %s273_s6 = scalar_select %p272_p12, %s1630_s18, 1  ;;  %v1496_v24 = vld [vmem:[%s1916_s2 + $0xb0] sm:$0xff]   ;;  %v1498_v29 = vld [vmem:[%s1916_s2 + $0x38] sm:$0xff]  }
  0x29   : > { %1391 = vmatprep.subr.bf16.mxu1 %v1484_v12 }
  0x2a   : > { %1312 = vmatpush3.bf16.msra.mxu0 %v1483_v11  ;;  %s1419_s13 = smul.u32 144, %s273_s6 }
  0x2b   : > { %1313 = vmatprep.subr.bf16.mxu0 %v1485_v13 }
  0x2c   : > { %1392 = vmatpush3.bf16.msra.mxu1 %v1484_v12  ;;  %s276_s6 = scalar_lea.vmem %s1914_s0, %s1419_s13 }
  0x2d   : > { %1393 = vmatprep.subr.bf16.mxu1 %v1487_v15  ;;  %s1802_s25 = scalar_lea.vmem %s276_s6, %s1303_s8 }
  0x2e   : > { %1314 = vmatpush3.bf16.msra.mxu0 %v1486_v14  ;;  %v1500_v26 = vld [vmem:[%s1802_s25 + $0x8] sm:$0xff]   ;;  %v1502_v28 = vld [vmem:[%s1802_s25 + $0x10] sm:$0xff]   ;;  %v1501_v30 = vld [vmem:[%s1802_s25] sm:$0xff]  }
  0x2f   : > { %1315 = vmatprep.subr.bf16.mxu0 %v1488_v16  ;;  %715 = vmatprep.mubr.bf16.mxu0 %v1500_v26  ;;  %v1504_v31 = vld [vmem:[%s1802_s25 + $0x10] sm:$0xff]   ;;  %v1503_v32 = vld [vmem:[%s1802_s25 + $0x18] sm:$0xff]   ;;  %v1508_v33 = vld [vmem:[%s1802_s25 + $0x20] sm:$0xff]  }
  0x30   : > { %1394 = vmatpush3.bf16.msra.mxu1 %v1487_v15  ;;  %1403 = vmatprep.mubr.bf16.mxu1 %v1502_v28  ;;  %v1505_v34 = vld [vmem:[%s1802_s25 + $0x8] sm:$0xff]   ;;  %v1506_v35 = vld [vmem:[%s1802_s25 + $0x18] sm:$0xff]   ;;  %v1514_v37 = vld [vmem:[%s1802_s25 + $0x30] sm:$0xff]  }
  0x31   : > { %1395 = vmatprep.subr.bf16.mxu1 %v1490_v17  ;;  %v1509_v36 = vld [vmem:[%s1802_s25 + $0x28] sm:$0xff]   ;;  %v1507_v38 = vld [vmem:[%s1802_s25 + $0x10] sm:$0xff]   ;;  %v1510_v39 = vld [vmem:[%s1802_s25 + $0x20] sm:$0xff]  }
  0x32   : > { %1316 = vmatpush3.bf16.msra.mxu0 %v1489_v18  ;;  %v1515_v40 = vld [vmem:[%s1802_s25 + $0x38] sm:$0xff]   ;;  %v1520_v41 = vld [vmem:[%s1802_s25 + $0x40] sm:$0xff]   ;;  %v1512_v43 = vld [vmem:[%s1802_s25 + $0x28] sm:$0xff]  }
  0x33   : > { %1317 = vmatprep.subr.bf16.mxu0 %v1491_v19  ;;  %v1511_v42 = vld [vmem:[%s1802_s25 + $0x18] sm:$0xff]   ;;  %v1521_v44 = vld [vmem:[%s1802_s25 + $0x48] sm:$0xff]   ;;  %v1513_v45 = vld [vmem:[%s1802_s25 + $0x20] sm:$0xff]  }
  0x34   : > { %1396 = vmatpush3.bf16.msra.mxu1 %v1490_v17  ;;  %v1516_v46 = vld [vmem:[%s1802_s25 + $0x30] sm:$0xff]   ;;  %v1517_v47 = vld [vmem:[%s1802_s25 + $0x28] sm:$0xff]   ;;  %v1518_v48 = vld [vmem:[%s1802_s25 + $0x38] sm:$0xff]  }
  0x35   : > { %1397 = vmatprep.subr.bf16.mxu1 %v1493_v20  ;;  %v1519_v49 = vld [vmem:[%s1802_s25 + $0x30] sm:$0xff]   ;;  %v1522_v50 = vld [vmem:[%s1802_s25 + $0x40] sm:$0xff]   ;;  %v1523_v51 = vld [vmem:[%s1802_s25 + $0x38] sm:$0xff]   ;;  %s1306_s25 = sshll.u32 (%p1717_p6), %s1630_s18, 4 }
  0x36   : > { %1318 = vmatpush3.bf16.msra.mxu0 %v1492_v21  ;;  %s1026_s13 = sadd.s32 (%p1717_p6), %s1626_s17, %s1306_s25 }
  0x37   : > { %1319 = vmatprep.subr.bf16.mxu0 %v1494_v22  ;;  %s1298_s26 = sshll.u32 (%p1717_p6), %s1026_s13, 3 }
  0x38   : > { %1398 = vmatpush3.bf16.msra.mxu1 %v1493_v20  ;;  %s1028_s29 = scalar_lea.vmem (%p1717_p6), %s1918_s4, %s1298_s26 }
  0x39   : > { %1399 = vmatprep.subr.bf16.mxu1 %v1496_v24 }
  0x3a   : > { %1320 = vmatpush3.bf16.msra.mxu0 %v1495_v23 }
  0x3b   : > { %1321 = vmatprep.subr.bf16.mxu0 %v1497_v25 }
  0x3c   : > { %1400 = vmatpush3.bf16.msra.mxu1 %v1496_v24 }
  0x3d   : > { %1401 = vmatprep.subr.bf16.mxu1 %v1499_v27 }
  0x3e   : > { %1322 = vmatpush3.bf16.msra.mxu0 %v1498_v29 }
  0x40   : > { %1402 = vmatpush3.bf16.msra.mxu1 %v1499_v27 }
  0x41   : > { %716 = vmatmul.mubr.bf16.vlgmr.msra.gmra.mrb[0].mxu0 %v1501_v30 }
  0x42   : > { %723 = vmatprep.mubr.bf16.mxu0 %v1504_v31 }
  0x43   : > { %1404 = vmatmul.mubr.bf16.vlgmr.msra.gmra.mrb[0].mxu1 %v1503_v32 }
  0x44   : > { %1407 = vmatprep.mubr.bf16.mxu1 %v1508_v33 }
  0x49   : > { %724 = vmatmul.mubr.bf16.gmra.mrb[4].mxu0 %v1505_v34 }
  0x4a   : > { %731 = vmatprep.mubr.bf16.mxu0 %v1506_v35 }
  0x4b   : > { %1408 = vmatmul.mubr.bf16.gmra.mrb[4].mxu1 %v1509_v36 }
  0x4c   : > { %1411 = vmatprep.mubr.bf16.mxu1 %v1514_v37 }
  0x51   : > { %732 = vmatmul.mubr.bf16.gmra.mrb[8].mxu0 %v1507_v38 }
  0x52   : > { %739 = vmatprep.mubr.bf16.mxu0 %v1510_v39 }
  0x53   : > { %1412 = vmatmul.mubr.bf16.gmra.mrb[8].mxu1 %v1515_v40 }
  0x54   : > { %1415 = vmatprep.mubr.bf16.mxu1 %v1520_v41 }
  0x59   : > { %740 = vmatmul.mubr.bf16.gmra.mrb[12].mxu0 %v1511_v42 }
  0x5a   : > { %747 = vmatprep.mubr.bf16.mxu0 %v1512_v43 }
  0x5b   : > { %1416 = vmatmul.mubr.bf16.gmra.mrb[12].mxu1 %v1521_v44 }
  0x61   : > { %748 = vmatmul.mubr.bf16.gmra.mrb[16].mxu0 %v1513_v45 }
  0x62   : > { %755 = vmatprep.mubr.bf16.mxu0 %v1516_v46 }
  0x69   : > { %756 = vmatmul.mubr.bf16.gmra.mrb[20].mxu0 %v1517_v47 }
  0x6a   : > { %763 = vmatprep.mubr.bf16.mxu0 %v1518_v48 }
  0x71   : > { %764 = vmatmul.mubr.bf16.gmra.mrb[24].mxu0 %v1519_v49 }
  0x72   : > { %771 = vmatprep.mubr.bf16.mxu0 %v1522_v50 }
  0x79   : > { %772 = vmatmul.mubr.bf16.gmra.mrb[28].mxu0 %v1523_v51 }
 0x114   : > { %v1323_v52 = vpop.f32.mrb[0].mxu0 }
 0x115   : > { %v1324_v53 = vpop.f32.mrb[1].mxu0 }
 0x116   : > { %v1325_v55 = vadd.f32 %v1324_v53, %v1323_v52  ;;  %v1405_v56 = vpop.f32.mrb[0].mxu1  ;;  %v1326_v57 = vpop.f32.mrb[2].mxu0 }
 0x117   : > { %v814_v58 = vpop.f32.mrb[1].mxu1  ;;  %v1327_v59 = vpop.f32.mrb[3].mxu0 }
 0x118   : > { %v1328_v60 = vadd.f32 %v1327_v59, %v1326_v57  ;;  %v1406_v61 = vpop.f32.mrb[2].mxu1  ;;  %v718_v62 = vadd.f32 %v1325_v55, %v1843_v54 }
 0x119   : > { %v817_v63 = vpop.f32.mrb[3].mxu1 }
 0x11a   : > { %v721_v0 = vadd.f32 %v1328_v60, %v1843_v54  ;;  %v815_v1 = vadd.f32 %v814_v58, %v718_v62 }
 0x11c   : > { %v818_v2 = vadd.f32 %v817_v63, %v721_v0  ;;  %v1329_v3 = vpop.f32.mrb[4].mxu0  ;;  %877 = vxpose.xlu0.b32.start [1/16] %v815_v1, 128 }
 0x11d   : > { %v1330_v4 = vpop.f32.mrb[5].mxu0 }
 0x11e   : > { %v1331_v5 = vadd.f32 %v1330_v4, %v1329_v3  ;;  %v1332_v6 = vpop.f32.mrb[6].mxu0  ;;  %v1409_v7 = vpop.f32.mrb[4].mxu1 }
 0x11f   : > { %v1333_v8 = vpop.f32.mrb[7].mxu0  ;;  %v830_v9 = vpop.f32.mrb[5].mxu1 }
 0x120   : > { %v726_v10 = vadd.f32 %v1331_v5, %v1843_v54  ;;  %v1334_v11 = vadd.f32 %v1333_v8, %v1332_v6  ;;  %878 = vxpose.xlu0.b32.cont [2/16] %v818_v2, 128  ;;  %v1410_v12 = vpop.f32.mrb[6].mxu1 }
 0x121   : > { %v833_v13 = vpop.f32.mrb[7].mxu1 }
 0x122   : > { %v729_v14 = vadd.f32 %v1334_v11, %v1843_v54  ;;  %v823_v15 = vadd.f32 %v1405_v56, %v726_v10 }
 0x124   : > { %v1335_v16 = vpop.f32.mrb[8].mxu0  ;;  %879 = vxpose.xlu0.b32.cont [3/16] %v823_v15, 128  ;;  %v826_v17 = vadd.f32 %v1406_v61, %v729_v14 }
 0x125   : > { %v1336_v18 = vpop.f32.mrb[9].mxu0 }
 0x126   : > { %v1337_v19 = vadd.f32 %v1336_v18, %v1335_v16  ;;  %v1338_v20 = vpop.f32.mrb[10].mxu0  ;;  %v1413_v21 = vpop.f32.mrb[8].mxu1 }
 0x127   : > { %v1339_v22 = vpop.f32.mrb[11].mxu0  ;;  %v846_v23 = vpop.f32.mrb[9].mxu1 }
 0x128   : > { %v734_v24 = vadd.f32 %v1337_v19, %v1843_v54  ;;  %v1340_v25 = vadd.f32 %v1339_v22, %v1338_v20  ;;  %880 = vxpose.xlu0.b32.cont [4/16] %v826_v17, 128  ;;  %v1414_v26 = vpop.f32.mrb[10].mxu1 }
 0x129   : > { %v849_v27 = vpop.f32.mrb[11].mxu1 }
 0x12a   : > { %v831_v28 = vadd.f32 %v830_v9, %v734_v24  ;;  %v737_v29 = vadd.f32 %v1340_v25, %v1843_v54 }
 0x12c   : > { %v834_v30 = vadd.f32 %v833_v13, %v737_v29  ;;  %v1341_v31 = vpop.f32.mrb[12].mxu0  ;;  %881 = vxpose.xlu0.b32.cont [5/16] %v831_v28, 128 }
 0x12d   : > { %v1342_v32 = vpop.f32.mrb[13].mxu0 }
 0x12e   : > { %v1343_v33 = vadd.f32 %v1342_v32, %v1341_v31  ;;  %v1344_v34 = vpop.f32.mrb[14].mxu0  ;;  %v1417_v35 = vpop.f32.mrb[12].mxu1 }
 0x12f   : > { %v1345_v36 = vpop.f32.mrb[15].mxu0  ;;  %v862_v37 = vpop.f32.mrb[13].mxu1 }
 0x130   : > { %v742_v38 = vadd.f32 %v1343_v33, %v1843_v54  ;;  %v1346_v39 = vadd.f32 %v1345_v36, %v1344_v34  ;;  %882 = vxpose.xlu0.b32.cont [6/16] %v834_v30, 128  ;;  %v1418_v40 = vpop.f32.mrb[14].mxu1 }
 0x131   : > { %v865_v41 = vpop.f32.mrb[15].mxu1 }
 0x132   : > { %v745_v42 = vadd.f32 %v1346_v39, %v1843_v54  ;;  %v839_v43 = vadd.f32 %v1409_v7, %v742_v38 }
 0x134   : > { %v1347_v44 = vpop.f32.mrb[16].mxu0  ;;  %883 = vxpose.xlu0.b32.cont [7/16] %v839_v43, 128  ;;  %v842_v45 = vadd.f32 %v1410_v12, %v745_v42 }
 0x135   : > { %v1348_v46 = vpop.f32.mrb[17].mxu0 }
 0x136   : > { %v1349_v47 = vadd.f32 %v1348_v46, %v1347_v44  ;;  %v1350_v48 = vpop.f32.mrb[18].mxu0 }
 0x137   : > { %v1351_v49 = vpop.f32.mrb[19].mxu0 }
 0x138   : > { %v750_v50 = vadd.f32 %v1349_v47, %v1843_v54  ;;  %v1352_v51 = vadd.f32 %v1351_v49, %v1350_v48  ;;  %884 = vxpose.xlu0.b32.cont [8/16] %v842_v45, 128 }
 0x13a   : > { %v847_v52 = vadd.f32 %v846_v23, %v750_v50  ;;  %v753_v53 = vadd.f32 %v1352_v51, %v1843_v54 }
 0x13c   : > { %v850_v55 = vadd.f32 %v849_v27, %v753_v53  ;;  %v1353_v56 = vpop.f32.mrb[20].mxu0  ;;  %885 = vxpose.xlu0.b32.cont [9/16] %v847_v52, 128 }
 0x13d   : > { %v1354_v57 = vpop.f32.mrb[21].mxu0 }
 0x13e   : > { %v1355_v58 = vadd.f32 %v1354_v57, %v1353_v56  ;;  %v1356_v59 = vpop.f32.mrb[22].mxu0 }
 0x13f   : > { %v1357_v60 = vpop.f32.mrb[23].mxu0 }
 0x140   : > { %v758_v61 = vadd.f32 %v1355_v58, %v1843_v54  ;;  %v1358_v62 = vadd.f32 %v1357_v60, %v1356_v59  ;;  %886 = vxpose.xlu0.b32.cont [10/16] %v850_v55, 128  ;;  %v909_v55 = vld [vmem:[%s1862_s15] sm:$0xff] }
 0x142   : > { %v761_v63 = vadd.f32 %v1358_v62, %v1843_v54  ;;  %v855_v0 = vadd.f32 %v1413_v21, %v758_v61  ;;  %v910_v62 = vld [vmem:[%s1862_s15 + $0x8] sm:$0xff] }
 0x144   : > { %v1359_v1 = vpop.f32.mrb[24].mxu0  ;;  %887 = vxpose.xlu0.b32.cont [11/16] %v855_v0, 128  ;;  %v858_v2 = vadd.f32 %v1414_v26, %v761_v63 }
 0x145   : > { %v1360_v3 = vpop.f32.mrb[25].mxu0 }
 0x146   : > { %v1361_v4 = vadd.f32 %v1360_v3, %v1359_v1  ;;  %v1362_v5 = vpop.f32.mrb[26].mxu0 }
 0x147   : > { %v1363_v6 = vpop.f32.mrb[27].mxu0 }
 0x148   : > { %v766_v7 = vadd.f32 %v1361_v4, %v1843_v54  ;;  %v1364_v8 = vadd.f32 %v1363_v6, %v1362_v5  ;;  %888 = vxpose.xlu0.b32.cont [12/16] %v858_v2, 128  ;;  %v911_v6 = vld [vmem:[%s1862_s15 + $0x10] sm:$0xff] }
 0x14a   : > { %v863_v9 = vadd.f32 %v862_v37, %v766_v7  ;;  %v769_v10 = vadd.f32 %v1364_v8, %v1843_v54 }
 0x14c   : > { %v866_v11 = vadd.f32 %v865_v41, %v769_v10  ;;  %v1365_v12 = vpop.f32.mrb[28].mxu0  ;;  %889 = vxpose.xlu0.b32.cont [13/16] %v863_v9, 128 }
 0x14d   : > { %v1366_v13 = vpop.f32.mrb[29].mxu0 }
 0x14e   : > { %v1367_v14 = vadd.f32 %v1366_v13, %v1365_v12  ;;  %v1368_v15 = vpop.f32.mrb[30].mxu0 }
 0x14f   : > { %v1369_v16 = vpop.f32.mrb[31].mxu0 }
 0x150   : > { %v774_v17 = vadd.f32 %v1367_v14, %v1843_v54  ;;  %v1370_v18 = vadd.f32 %v1369_v16, %v1368_v15  ;;  %890 = vxpose.xlu0.b32.cont [14/16] %v866_v11, 128  ;;  %v912_v15 = vld [vmem:[%s1862_s15 + $0x18] sm:$0xff] }
 0x152   : > { %v777_v19 = vadd.f32 %v1370_v18, %v1843_v54  ;;  %v871_v20 = vadd.f32 %v1417_v35, %v774_v17 }
 0x154   : > { %891 = vxpose.xlu0.b32.cont [15/16] %v871_v20, 128  ;;  %v874_v21 = vadd.f32 %v1418_v40, %v777_v19 }
 0x158   : > { %892 = vxpose.xlu0.b32.end [16/16] %v874_v21, 128 }
 0x19c   : > { %v893_v22 = vpop.trf.xlu0 }
 0x19d   : > { %v1283_v25 = vmul.f32 -1.442695, %v893_v22 }
 0x19f   : > { %1524 = vpow2.f32 %v1283_v25 }
 0x1a0   : > { %v894_v23 = vpop.trf.xlu0 }
 0x1a1   : > { %v1284_v27 = vmul.f32 -1.442695, %v894_v23 }
 0x1a3   : > { %1526 = vpow2.f32 %v1284_v27 }
 0x1a4   : > { %v895_v24 = vpop.trf.xlu0 }
 0x1a5   : > { %v1285_v30 = vmul.f32 -1.442695, %v895_v24 }
 0x1a8   : > { %v896_v26 = vpop.trf.xlu0 }
 0x1a9   : > { %v1286_v54 = vmul.f32 -1.442695, %v896_v26  ;;  %v1525_v33 = vpop.eup %1524 }
 0x1aa   : > { %v949_v36 = vadd.f32 1.0, %v1525_v33 }
 0x1ac   : > { %v897_v28 = vpop.trf.xlu0 }
 0x1ad   : > { %v1287_v29 = vmul.f32 -1.442695, %v897_v28  ;;  %v1527_v37 = vpop.eup %1526 }
 0x1ae   : > { %v950_v42 = vadd.f32 1.0, %v1527_v37 }
 0x1af   : > { %1528 = vpow2.f32 %v1287_v29 }
 0x1b0   : > { %v898_v31 = vpop.trf.xlu0  ;;  %1530 = vpow2.f32 %v1285_v30 }
 0x1b1   : > { %v1288_v32 = vmul.f32 -1.442695, %v898_v31 }
 0x1b3   : > { %1532 = vpow2.f32 %v1288_v32 }
 0x1b4   : > { %v899_v34 = vpop.trf.xlu0  ;;  %1534 = vpow2.f32 %v1286_v54 }
 0x1b5   : > { %v1289_v35 = vmul.f32 -1.442695, %v899_v34 }
 0x1b7   : > { %1536 = vpow2.f32 %v1289_v35 }
 0x1b8   : > { %v900_v38 = vpop.trf.xlu0  ;;  %1538 = vrcp.f32 %v949_v36 }
 0x1b9   : > { %v1529_v39 = vpop.eup %1528  ;;  %v1290_v40 = vmul.f32 -1.442695, %v900_v38 }
 0x1ba   : > { %v953_v41 = vadd.f32 1.0, %v1529_v39  ;;  %v1531_v43 = vpop.eup %1530 }
 0x1bb   : > { %1540 = vpow2.f32 %v1290_v40  ;;  %v951_v47 = vadd.f32 1.0, %v1531_v43 }
 0x1bc   : > { %1542 = vrcp.f32 %v953_v41  ;;  %v901_v44 = vpop.trf.xlu0 }
 0x1bd   : > { %v1533_v45 = vpop.eup %1532  ;;  %1544 = vtanh.f32 %v901_v44 }
 0x1be   : > { %v954_v46 = vadd.f32 1.0, %v1533_v45  ;;  %1546 = vrcp.f32 %v950_v42  ;;  %v1535_v48 = vpop.eup %1534 }
 0x1bf   : > { %v952_v52 = vadd.f32 1.0, %v1535_v48 }
 0x1c0   : > { %1548 = vrcp.f32 %v954_v46  ;;  %v902_v49 = vpop.trf.xlu0 }
 0x1c1   : > { %v1537_v50 = vpop.eup %1536  ;;  %1550 = vtanh.f32 %v902_v49 }
 0x1c2   : > { %v955_v51 = vadd.f32 1.0, %v1537_v50  ;;  %1552 = vrcp.f32 %v951_v47  ;;  %v1539_v53 = vpop.eup %1538 }
 0x1c4   : > { %1554 = vrcp.f32 %v955_v51  ;;  %v903_v56 = vpop.trf.xlu0 }
 0x1c5   : > { %v1541_v57 = vpop.eup %1540  ;;  %1556 = vtanh.f32 %v903_v56 }
 0x1c6   : > { %v1543_v58 = vpop.eup %1542  ;;  %v956_v59 = vadd.f32 1.0, %v1541_v57  ;;  %1558 = vrcp.f32 %v952_v52 }
 0x1c7   : > { %v1545_v60 = vpop.eup %1544  ;;  %v985_v61 = vmul.f32 %v1543_v58, %v909_v55 }
 0x1c8   : > { %1560 = vrcp.f32 %v956_v59  ;;  %v993_v63 = vmul.f32 %v1545_v60, %v1539_v53  ;;  %v904_v0 = vpop.trf.xlu0  ;;  %v1547_v1 = vpop.eup %1546 }
 0x1c9   : > { %1562 = vtanh.f32 %v904_v0 }
 0x1ca   : > { %v1549_v2 = vpop.eup %1548  ;;  %v997_v3 = vadd.f32 %v993_v63, %v985_v61 }
 0x1cb   : > { %v1551_v4 = vpop.eup %1550  ;;  %v986_v5 = vmul.f32 %v1549_v2, %v910_v62 }
 0x1cc   : > { %1013 = vst [vmem:[%s1867_s24 + $0x20] sm:$0xff] %v997_v3  ;;  %v994_v7 = vmul.f32 %v1551_v4, %v1547_v1  ;;  %v905_v8 = vpop.trf.xlu0  ;;  %v1553_v9 = vpop.eup %1552 }
 0x1cd   : > { %v1291_v10 = vmul.f32 -1.442695, %v905_v8 }
 0x1ce   : > { %v1555_v11 = vpop.eup %1554  ;;  %v998_v12 = vadd.f32 %v994_v7, %v986_v5 }
 0x1cf   : > { %v1557_v13 = vpop.eup %1556  ;;  %v987_v14 = vmul.f32 %v1555_v11, %v911_v6  ;;  %1564 = vpow2.f32 %v1291_v10 }
 0x1d0   : > { %1014 = vst [vmem:[%s1867_s24 + $0x28] sm:$0xff] %v998_v12  ;;  %v995_v16 = vmul.f32 %v1557_v13, %v1553_v9  ;;  %v906_v17 = vpop.trf.xlu0  ;;  %v1559_v18 = vpop.eup %1558 }
 0x1d1   : > { %v1292_v19 = vmul.f32 -1.442695, %v906_v17 }
 0x1d2   : > { %v1561_v20 = vpop.eup %1560  ;;  %v999_v21 = vadd.f32 %v995_v16, %v987_v14 }
 0x1d3   : > { %v1563_v22 = vpop.eup %1562  ;;  %v988_v23 = vmul.f32 %v1561_v20, %v912_v15  ;;  %1566 = vpow2.f32 %v1292_v19  ;;  %v1078_v53 = vld [vmem:[%s1867_s24 + $0x20] sm:$0xff] (%p1717_p6) }
 0x1d4   : > { %1015 = vst [vmem:[%s1867_s24 + $0x30] sm:$0xff] %v999_v21  ;;  %v996_v24 = vmul.f32 %v1563_v22, %v1559_v18  ;;  %v907_v25 = vpop.trf.xlu0  ;;  %1079 = vst [vmem:[%s1028_s29 + $0x40] sm:$0xff] (%p1717_p6), %v1078_v53 }
 0x1d5   : > { %v1293_v26 = vmul.f32 -1.442695, %v907_v25 }
 0x1d6   : > { %v1000_v27 = vadd.f32 %v996_v24, %v988_v23 }
 0x1d7   : > { %1568 = vpow2.f32 %v1293_v26  ;;  %v1080_v55 = vld [vmem:[%s1867_s24 + $0x28] sm:$0xff] (%p1717_p6) }
 0x1d8   : > { %1016 = vst [vmem:[%s1867_s24 + $0x38] sm:$0xff] %v1000_v27  ;;  %v908_v28 = vpop.trf.xlu0  ;;  %1570 = vtanh.f32 %v997_v3  ;;  %1081 = vst [vmem:[%s1028_s29 + $0x50] sm:$0xff] (%p1717_p6), %v1080_v55 }
 0x1d9   : > { %v1565_v29 = vpop.eup %1564  ;;  %v1294_v30 = vmul.f32 -1.442695, %v908_v28 }
 0x1da   : > { %v957_v31 = vadd.f32 1.0, %v1565_v29 }
 0x1db   : > { %1572 = vpow2.f32 %v1294_v30  ;;  %v1082_v56 = vld [vmem:[%s1867_s24 + $0x30] sm:$0xff] (%p1717_p6) }
 0x1dc   : > { %1574 = vrcp.f32 %v957_v31  ;;  %1083 = vst [vmem:[%s1028_s29 + $0x60] sm:$0xff] (%p1717_p6), %v1082_v56 }
 0x1dd   : > { %v1567_v32 = vpop.eup %1566  ;;  %1576 = vtanh.f32 %v998_v12 }
 0x1de   : > { %v958_v54 = vadd.f32 1.0, %v1567_v32 }
 0x1df   : > { %v1084_v57 = vld [vmem:[%s1867_s24 + $0x38] sm:$0xff] (%p1717_p6) }
 0x1e0   : > { %1578 = vrcp.f32 %v958_v54  ;;  %1085 = vst [vmem:[%s1028_s29 + $0x70] sm:$0xff] (%p1717_p6), %v1084_v57 }
 0x1e1   : > { %v1569_v33 = vpop.eup %1568  ;;  %1580 = vtanh.f32 %v999_v21 }
 0x1e2   : > { %v959_v34 = vadd.f32 1.0, %v1569_v33  ;;  %v1571_v35 = vpop.eup %1570 }
 0x1e4   : > { %1582 = vrcp.f32 %v959_v34 }
 0x1e5   : > { %v1573_v36 = vpop.eup %1572  ;;  %1584 = vtanh.f32 %v1000_v27 }
 0x1e6   : > { %v1575_v37 = vpop.eup %1574  ;;  %v960_v38 = vadd.f32 1.0, %v1573_v36 }
 0x1e7   : > { %v1005_v39 = vmul.f32 %v1575_v37, %v1571_v35  ;;  %v1577_v40 = vpop.eup %1576 }
 0x1e8   : > { %1586 = vrcp.f32 %v960_v38 }
 0x1e9   : > { %1009 = vst [vmem:[%s1867_s24] sm:$0xff] %v1005_v39 }
 0x1ea   : > { %v1579_v41 = vpop.eup %1578 }
 0x1eb   : > { %v1006_v42 = vmul.f32 %v1579_v41, %v1577_v40  ;;  %v1581_v43 = vpop.eup %1580 }
 0x1ed   : > { %1010 = vst [vmem:[%s1867_s24 + $0x8] sm:$0xff] %v1006_v42 }
 0x1ee   : > { %v1583_v44 = vpop.eup %1582 }
 0x1ef   : > { %v1007_v45 = vmul.f32 %v1583_v44, %v1581_v43  ;;  %v1585_v46 = vpop.eup %1584  ;;  %1023 = sbr.rel (!%p1717_p6) target bundleno = 510 (0x1fe), region = 78 }
 0x1f0   : > { %v1070_v49 = vld [vmem:[%s1867_s24] sm:$0xff] (%p1717_p6) }
 0x1f1   : > { %1011 = vst [vmem:[%s1867_s24 + $0x10] sm:$0xff] %v1007_v45  ;;  %1071 = vst [vmem:[%s1028_s29] sm:$0xff] (%p1717_p6), %v1070_v49 }
 0x1f2   : > { %v1587_v47 = vpop.eup %1586 }
 0x1f3   : > { %v1008_v48 = vmul.f32 %v1587_v47, %v1585_v46 }
 0x1f4   : > { %v1072_v50 = vld [vmem:[%s1867_s24 + $0x8] sm:$0xff] (%p1717_p6) }
 0x1f5   : > { %1012 = vst [vmem:[%s1867_s24 + $0x18] sm:$0xff] %v1008_v48  ;;  %1073 = vst [vmem:[%s1028_s29 + $0x10] sm:$0xff] (%p1717_p6), %v1072_v50 }
 0x1f8   : > { %v1074_v51 = vld [vmem:[%s1867_s24 + $0x10] sm:$0xff] }
 0x1f9   : > { %1075 = vst [vmem:[%s1028_s29 + $0x20] sm:$0xff] %v1074_v51 }
 0x1fc   : > { %v1076_v52 = vld [vmem:[%s1867_s24 + $0x18] sm:$0xff] }
 0x1fd   : > { %1077 = vst [vmem:[%s1028_s29 + $0x30] sm:$0xff] %v1076_v52 }
 0x1fe PF: > { %s14_s21 = sadd.s32 1, %s1642_s21   ;;  %s1920_s15 = smov %s1622_s16 }
 0x1ff   : > { %p11_p13 = scmp.ge.s32.totalorder %s14_s21, 6   ;;  %s1921_s16 = smov %s1725_s30 }
 0x200   : > { %s1922_s17 = smov %s1634_s19  ;;  %s1923_s18 = smov %s1638_s20 }
 0x201   : > { %s1924_s19 = smov %s1927_s22  ;;  %s1925_s20 = smov %s1931_s23 }
 0x202   :  { %13 = sbr.rel (!%p11_p13) target bundleno = 4 (0x4), region = 153 }

</bundles_post_ra>
